<compile_context>
chip_gen: v6e
topology: v6e:2x2x1
jax: 0.10.0
libtpu: 0.0.40
codegen_flags: <defaults>
</compile_context>

<pallas_src>
import functools

import jax
import jax.numpy as jnp
from jax import lax
from jax.experimental import pallas as pl
from jax.experimental.pallas import tpu as pltpu

NUM_ATOM_TYPE = 120
NUM_CHIRALITY_TAG = 3
NUM_BOND_TYPE = 6
NUM_BOND_DIRECTION = 3
BN_EPS = 1e-5


def _round_up(x, m):
    return ((x + m - 1) // m) * m


def _vmem_limit_bytes():
    # Generation-aware VMEM request: ~85% of physical capacity capped at
    # 112 MiB (uses most of v5e/v6e's 128 MiB, leaves ~10 MiB headroom on
    # v7x's 64 MiB for Mosaic internal scratch / pipeline buffers).  Falls
    # back to the previously-working 64 MiB if the query is unavailable.
    try:
        cap = pltpu.get_tpu_info().vmem_capacity_bytes
        return int(min(112 * 1024 * 1024, cap * 0.85))
    except Exception:
        return 64 * 1024 * 1024


# ----------------------------- Pallas kernel -------------------------------

def _fused_gin_kernel(adj_hbm_ref, x0_ref, cnt_ref,
                      w1_ref, b1_ref, w2_ref, bnp_ref, e_ref,
                      out_ref,
                      h_ref, adj_ref, ones_ref, dma_sem,
                      *, n_valid):
    layer = pl.program_id(0)
    last = pl.num_programs(0) - 1

    @pl.when(layer == 0)
    def _init():
        # One-time setup: DMA the dense adjacency into a single-buffered VMEM
        # scratch (no 2x pipeline buffer for the N^2 monster), load the
        # initial node embeddings into the resident state, and build the
        # valid-row mask used to run the BatchNorm reductions on the MXU.
        cp = pltpu.make_async_copy(adj_hbm_ref, adj_ref, dma_sem)
        cp.start()
        h_ref[...] = x0_ref[...]
        col = lax.broadcasted_iota(jnp.int32, ones_ref.shape, 1)
        ones_ref[...] = (col < n_valid).astype(jnp.float32)
        cp.wait()

    # Aggregated edge embeddings per target node: one fused K=16 matmul
    # (bond-type counts in cols 0..7, bond-direction counts in cols 8..15).
    eagg = jnp.dot(cnt_ref[...], e_ref[0], preferred_element_type=jnp.float32)

    # GIN aggregation (aggr='add', self loop included in adj): adj holds small
    # integer counts (bf16-exact); h is the resident bf16 state.
    aggr = jnp.dot(adj_ref[...], h_ref[...],
                   preferred_element_type=jnp.float32) + eagg

    # GIN update MLP: Linear(D, 2D) -> ReLU -> Linear(2D, D); bf16 MXU inputs,
    # f32 accumulation.  b2 / gamma / beta are packed rows of one block.
    bnp = bnp_ref[0]                                             # (8, d_p)
    h1 = jnp.dot(aggr.astype(jnp.bfloat16), w1_ref[0],
                 preferred_element_type=jnp.float32) + b1_ref[0]
    h1 = jnp.maximum(h1, 0.0)
    h2 = jnp.dot(h1.astype(jnp.bfloat16), w2_ref[0],
                 preferred_element_type=jnp.float32) + bnp[0:1, :]

    # BatchNorm1d (training-mode batch stats, biased variance) over the
    # n_valid real rows only.  Reductions run on the MXU via the valid-ones
    # row block; padded rows never feed the stats and their (nonzero) values
    # never leak back (adj columns for padded nodes are zero).
    ones = ones_ref[...]
    inv_n = 1.0 / float(max(n_valid, 1))
    mean = jnp.dot(ones, h2, preferred_element_type=jnp.float32)[0:1, :] * inv_n
    ex2 = jnp.dot(ones, h2 * h2,
                  preferred_element_type=jnp.float32)[0:1, :] * inv_n
    var = jnp.maximum(ex2 - mean * mean, 0.0)
    hn = (h2 - mean) * lax.rsqrt(var + BN_EPS) * bnp[1:2, :] + bnp[2:3, :]

    @pl.when(layer < last)
    def _hidden():
        # F.relu followed by dropout(p=0) (no-op); resident state stays bf16.
        h_ref[...] = jnp.maximum(hn, 0.0).astype(jnp.bfloat16)

    @pl.when(layer == last)
    def _final():
        # Last layer: dropout(p=0) only; then node_repr[~isfinite] = 0.0.
        # Only out_ref is written (resident h is dead after this layer).
        out_ref[...] = jnp.where(jnp.isfinite(hn), hn, 0.0)


def _fused_gnn_call(adj, x0, cnt, stacked, *, num_layer, n_valid):
    n_p, d_p = x0.shape
    h_p = stacked["w1_s"].shape[-1]

    const2 = lambda l: (0, 0)
    perlayer3 = lambda l: (l, 0, 0)

    grid_spec = pltpu.PrefetchScalarGridSpec(
        num_scalar_prefetch=0,
        grid=(num_layer,),
        in_specs=[
            pl.BlockSpec(memory_space=pl.ANY),       # adj: stays in HBM
            pl.BlockSpec((n_p, d_p), const2),        # x0 (bf16, tiny)
            pl.BlockSpec((n_p, 16), const2),         # fused bond counts (tiny)
            pl.BlockSpec((1, d_p, h_p), perlayer3),  # w1 (bf16)
            pl.BlockSpec((1, 1, h_p), perlayer3),    # b1
            pl.BlockSpec((1, h_p, d_p), perlayer3),  # w2 (bf16)
            pl.BlockSpec((1, 8, d_p), perlayer3),    # packed b2|gamma|beta
            pl.BlockSpec((1, 16, d_p), perlayer3),   # fused edge embeddings
        ],
        out_specs=pl.BlockSpec((n_p, d_p), const2),
        scratch_shapes=[
            pltpu.VMEM((n_p, d_p), jnp.bfloat16),    # resident h (bf16)
            pltpu.VMEM((n_p, n_p), jnp.bfloat16),    # resident adj, 1 buffer
            pltpu.VMEM((8, n_p), jnp.float32),       # valid-row mask (BN/MXU)
            pltpu.SemaphoreType.DMA,                 # adj DMA semaphore
        ],
    )

    kernel = functools.partial(_fused_gin_kernel, n_valid=n_valid)
    return pl.pallas_call(
        kernel,
        out_shape=jax.ShapeDtypeStruct((n_p, d_p), jnp.float32),
        grid_spec=grid_spec,
        compiler_params=pltpu.CompilerParams(
            dimension_semantics=("arbitrary",),      # layers are sequential
            vmem_limit_bytes=_vmem_limit_bytes(),
        ),
    )(adj, x0, cnt,
      stacked["w1_s"], stacked["b1_s"], stacked["w2_s"],
      stacked["bnp_s"], stacked["e_s"])


# ----------------------------- parameter setup ------------------------------

def _xavier_uniform(key, shape):
    fan_in, fan_out = shape[0], shape[1]
    limit = (6.0 / (fan_in + fan_out)) ** 0.5
    return jax.random.uniform(key, shape, jnp.float32, -limit, limit)


def init_params(key, num_layer, emb_dim):
    d = emb_dim
    h = 2 * emb_dim
    d_p = _round_up(d, 128)
    h_p = 2 * d_p

    keys = jax.random.split(key, 2 + 6 * num_layer)
    params = {
        "x_emb1": _xavier_uniform(keys[0], (NUM_ATOM_TYPE, d)),
        "x_emb2": _xavier_uniform(keys[1], (NUM_CHIRALITY_TAG, d)),
    }

    w1s, b1s, w2s, bnps, es = ([] for _ in range(5))
    for l in range(num_layer):
        k = keys[2 + 6 * l: 2 + 6 * (l + 1)]
        w1 = _xavier_uniform(k[0], (d, h))
        b1 = 0.01 * jax.random.normal(k[1], (1, h), jnp.float32)
        w2 = _xavier_uniform(k[2], (h, d))
        b2 = 0.01 * jax.random.normal(k[3], (1, d), jnp.float32)
        e1 = _xavier_uniform(k[4], (NUM_BOND_TYPE, d))
        e2 = _xavier_uniform(k[5], (NUM_BOND_DIRECTION, d))

        # Zero-pad to lane-dense shapes; padded channels carry zero weights /
        # gamma / beta so they produce exactly zero and never affect BN stats.
        w1s.append(jnp.pad(w1, ((0, d_p - d), (0, h_p - h))))
        b1s.append(jnp.pad(b1, ((0, 0), (0, h_p - h))))
        w2s.append(jnp.pad(w2, ((0, h_p - h), (0, d_p - d))))

        # Packed BN/bias block: row 0 = b2, row 1 = gamma, row 2 = beta.
        b2_row = jnp.pad(b2, ((0, 0), (0, d_p - d)))
        gamma_row = jnp.pad(jnp.ones((1, d), jnp.float32),
                            ((0, 0), (0, d_p - d)))
        beta_row = jnp.zeros((1, d_p), jnp.float32)
        bnps.append(jnp.concatenate(
            [b2_row, gamma_row, beta_row, jnp.zeros((5, d_p), jnp.float32)],
            axis=0))

        # Fused edge-embedding table: rows 0..5 bond types, rows 8..10 dirs.
        e1p = jnp.pad(e1, ((0, 8 - NUM_BOND_TYPE), (0, d_p - d)))
        e2p = jnp.pad(e2, ((0, 8 - NUM_BOND_DIRECTION), (0, d_p - d)))
        es.append(jnp.concatenate([e1p, e2p], axis=0))

    params["w1_s"] = jnp.stack(w1s).astype(jnp.bfloat16)        # [L, Dp, Hp]
    params["b1_s"] = jnp.stack(b1s)                             # [L, 1, Hp]
    params["w2_s"] = jnp.stack(w2s).astype(jnp.bfloat16)        # [L, Hp, Dp]
    params["bnp_s"] = jnp.stack(bnps)                           # [L, 8, Dp]
    params["e_s"] = jnp.stack(es)                               # [L, 16, Dp]
    return params


# ------------------------------ GNN forward ---------------------------------

@functools.partial(jax.jit, static_argnums=(4, 5))
def gnn_forward(params, x_int, edge_index, edge_attr, num_layer, emb_dim):
    n = x_int.shape[0]
    d = emb_dim
    n_p = _round_up(n, 16)        # sublane-friendly node padding (bf16 tiles)
    d_p = _round_up(d, 128)       # lane-dense feature padding

    # x.shape[1] == 2 path: x_embedding1(x[:,0]) + x_embedding2(x[:,1])
    # (one-time data-dependent gather -> JAX glue)
    h0 = params["x_emb1"][x_int[:, 0]] + params["x_emb2"][x_int[:, 1]]
    h0 = jnp.pad(h0, ((0, n_p - n), (0, d_p - d))).astype(jnp.bfloat16)

    # add_self_loops + self-loop edge_attr (bond type 4, direction 0)
    self_idx = jnp.arange(n, dtype=edge_index.dtype)
    ei = jnp.concatenate([edge_index, jnp.stack([self_idx, self_idx])], axis=1)
    self_loop_attr = jnp.zeros((n, 2), edge_attr.dtype).at[:, 0].set(4)
    ea = jnp.concatenate([edge_attr, self_loop_attr], axis=0)
    src, tgt = ei[0], ei[1]

    # One-time data-dependent scatter-adds (JAX glue):
    #   adj[i, j]     = #edges j -> i (incl. self loop), exact in bf16
    #   cnt[i, 0:8]   = #incoming edges of node i with bond type t
    #   cnt[i, 8:16]  = #incoming edges of node i with bond direction r
    adj = (jnp.zeros((n_p, n_p), jnp.float32)
           .at[tgt, src].add(1.0).astype(jnp.bfloat16))
    cnt = (jnp.zeros((n_p, 16), jnp.float32)
           .at[tgt, ea[:, 0]].add(1.0)
           .at[tgt, ea[:, 1] + 8].add(1.0))

    out_p = _fused_gnn_call(adj, h0, cnt, params,
                            num_layer=num_layer, n_valid=n)
    # JK == 'last' -> h_list[-1]; strip padding
    return out_p[:n, :d]


# --------------------------------- main --------------------------------------

if __name__ == "__main__":
    num_layer = 2
    emb_dim = 32
    num_nodes = 8
    num_edges = 16

    key = jax.random.PRNGKey(0)
    k_param, k_x0, k_x1, k_ei, k_e0, k_e1 = jax.random.split(key, 6)

    params = init_params(k_param, num_layer, emb_dim)

    x_int = jnp.stack(
        [jax.random.randint(k_x0, (num_nodes,), 0, NUM_ATOM_TYPE),
         jax.random.randint(k_x1, (num_nodes,), 0, NUM_CHIRALITY_TAG)],
        axis=1).astype(jnp.int32)                                  # [N, 2]
    edge_index = jax.random.randint(k_ei, (2, num_edges), 0, num_nodes,
                                    dtype=jnp.int32)               # [2, E]
    edge_attr = jnp.stack(
        [jax.random.randint(k_e0, (num_edges,), 0, NUM_BOND_TYPE),
         jax.random.randint(k_e1, (num_edges,), 0, NUM_BOND_DIRECTION)],
        axis=1).astype(jnp.int32)                                  # [E, 2]

    out = gnn_forward(params, x_int, edge_index, edge_attr, num_layer, emb_dim)
    out = jax.block_until_ready(out)
    assert out.shape == (num_nodes, emb_dim)
    assert bool(jnp.all(jnp.isfinite(out)))
    print("KERNEL_OK")
</pallas_src>

<mosaic_0001>
module attributes {stable_mosaic.version = 11 : i64} {
  func.func private @main(%arg0: i32) attributes {dimension_semantics = [#tpu.dimension_semantics<core_parallel>], iteration_bounds = array<i64: 2>, tpu.core_type = #tpu.core_type<sc_scalar_subcore>, window_params = []} {
    return
  }
}

module attributes {stable_mosaic.version = 11 : i64} {
  func.func private @main(%arg0: i32) attributes {dimension_semantics = [#tpu.dimension_semantics<core_parallel>], iteration_bounds = array<i64: 2>, tpu.core_type = #tpu.core_type<sc_scalar_subcore>, window_params = []} {
    return
  }
}

module attributes {stable_mosaic.version = 11 : i64} {
  func.func @_fused_gin_kernel(%arg0: i32, %arg1: memref<16x16xbf16, #tpu.memory_space<any>>, %arg2: memref<16x128xbf16, #tpu.memory_space<vmem>>, %arg3: memref<16x16xf32, #tpu.memory_space<vmem>>, %arg4: memref<1x128x256xbf16, #tpu.memory_space<vmem>>, %arg5: memref<1x1x256xf32, #tpu.memory_space<vmem>>, %arg6: memref<1x256x128xbf16, #tpu.memory_space<vmem>>, %arg7: memref<1x8x128xf32, #tpu.memory_space<vmem>>, %arg8: memref<1x16x128xf32, #tpu.memory_space<vmem>>, %arg9: memref<16x128xf32, #tpu.memory_space<vmem>>, %arg10: memref<16x128xbf16, #tpu.memory_space<vmem>>, %arg11: memref<16x16xbf16, #tpu.memory_space<vmem>>, %arg12: memref<8x16xf32, #tpu.memory_space<vmem>>, %arg13: memref<!tpu.dma_semaphore, #tpu.memory_space<semaphore_mem>>) attributes {dimension_semantics = [#tpu.dimension_semantics<arbitrary>], iteration_bounds = array<i64: 2>, scalar_prefetch = 0 : i64, scratch_operands = 4 : i64, tpu.core_type = #tpu.core_type<tc>, window_params = [{}, {pipeline_mode = #tpu.pipeline_mode<synchronous>, transform_indices = @transform_1, window_bounds = array<i64: 16, 128>}, {pipeline_mode = #tpu.pipeline_mode<synchronous>, transform_indices = @transform_2, window_bounds = array<i64: 16, 16>}, {transform_indices = @transform_3, window_bounds = array<i64: 1, 128, 256>}, {transform_indices = @transform_4, window_bounds = array<i64: 1, 1, 256>}, {transform_indices = @transform_5, window_bounds = array<i64: 1, 256, 128>}, {transform_indices = @transform_6, window_bounds = array<i64: 1, 8, 128>}, {transform_indices = @transform_7, window_bounds = array<i64: 1, 16, 128>}, {pipeline_mode = #tpu.pipeline_mode<synchronous>, transform_indices = @transform_8, window_bounds = array<i64: 16, 128>}]} {
    %c0_i32 = arith.constant 0 : i32
    %0 = arith.cmpi eq, %arg0, %c0_i32 : i32
    %1 = arith.extui %0 : i1 to i32
    %c0_i32_0 = arith.constant 0 : i32
    %2 = arith.cmpi ne, %1, %c0_i32_0 : i32
    scf.if %2 {
      tpu.enqueue_dma source(%arg1 : memref<16x16xbf16, #tpu.memory_space<any>>) target(%arg11 : memref<16x16xbf16, #tpu.memory_space<vmem>>) target_semaphore(%arg13 : memref<!tpu.dma_semaphore, #tpu.memory_space<semaphore_mem>>)
      %c0_36 = arith.constant 0 : index
      %c0_37 = arith.constant 0 : index
      %63 = vector.load %arg2[%c0_36, %c0_37] : memref<16x128xbf16, #tpu.memory_space<vmem>>, vector<16x128xbf16>
      %c0_38 = arith.constant 0 : index
      %c0_39 = arith.constant 0 : index
      %64 = vector.load %arg10[%c0_38, %c0_39] : memref<16x128xbf16, #tpu.memory_space<vmem>>, vector<16x128xbf16>
      tpu.vector_store %arg10[%c0_38, %c0_39], %63 {strides = array<i32>} : memref<16x128xbf16, #tpu.memory_space<vmem>>, vector<16x128xbf16>,
      %65 = tpu.iota {dimensions = array<i32: 1>} : vector<8x16xi32>
      %c8_i32 = arith.constant 8 : i32
      %66 = vector.broadcast %c8_i32 : i32 to vector<8x16xi32>
      %67 = arith.cmpi slt, %65, %66 : vector<8x16xi32>
      %68 = arith.extui %67 : vector<8x16xi1> to vector<8x16xi32>
      %69 = arith.sitofp %68 : vector<8x16xi32> to vector<8x16xf32>
      %c0_40 = arith.constant 0 : index
      %c0_41 = arith.constant 0 : index
      %70 = vector.load %arg12[%c0_40, %c0_41] : memref<8x16xf32, #tpu.memory_space<vmem>>, vector<8x16xf32>
      tpu.vector_store %arg12[%c0_40, %c0_41], %69 {strides = array<i32>} : memref<8x16xf32, #tpu.memory_space<vmem>>, vector<8x16xf32>,
      tpu.wait_dma2 semaphore(%arg13 : memref<!tpu.dma_semaphore, #tpu.memory_space<semaphore_mem>>) src(%arg1 : memref<16x16xbf16, #tpu.memory_space<any>>) dst(%arg11 : memref<16x16xbf16, #tpu.memory_space<vmem>>)
    } else {
    }
    %c0 = arith.constant 0 : index
    %c0_1 = arith.constant 0 : index
    %3 = vector.load %arg3[%c0, %c0_1] : memref<16x16xf32, #tpu.memory_space<vmem>>, vector<16x16xf32>
    %c0_2 = arith.constant 0 : index
    %c0_3 = arith.constant 0 : index
    %c0_4 = arith.constant 0 : index
    %4 = vector.load %arg8[%c0_2, %c0_3, %c0_4] : memref<1x16x128xf32, #tpu.memory_space<vmem>>, vector<1x16x128xf32>
    %5 = vector.shape_cast %4 : vector<1x16x128xf32> to vector<16x128xf32>
    %cst = arith.constant dense<0.000000e+00> : vector<16x128xf32>
    %6 = tpu.matmul %3, %5, %cst {dimension_numbers = #tpu.dot_dimension_numbers<[1], [0], [0], [1], [0, 0, 1, 1], [], []>} : vector<16x16xf32>, vector<16x128xf32>, vector<16x128xf32> -> vector<16x128xf32>
    %c0_5 = arith.constant 0 : index
    %c0_6 = arith.constant 0 : index
    %7 = vector.load %arg11[%c0_5, %c0_6] : memref<16x16xbf16, #tpu.memory_space<vmem>>, vector<16x16xbf16>
    %c0_7 = arith.constant 0 : index
    %c0_8 = arith.constant 0 : index
    %8 = vector.load %arg10[%c0_7, %c0_8] : memref<16x128xbf16, #tpu.memory_space<vmem>>, vector<16x128xbf16>
    %cst_9 = arith.constant dense<0.000000e+00> : vector<16x128xf32>
    %9 = tpu.matmul %7, %8, %cst_9 {dimension_numbers = #tpu.dot_dimension_numbers<[1], [0], [0], [1], [0, 0, 1, 1], [], []>} : vector<16x16xbf16>, vector<16x128xbf16>, vector<16x128xf32> -> vector<16x128xf32>
    %10 = arith.addf %9, %6 : vector<16x128xf32>
    %c0_10 = arith.constant 0 : index
    %c0_11 = arith.constant 0 : index
    %c0_12 = arith.constant 0 : index
    %11 = vector.load %arg7[%c0_10, %c0_11, %c0_12] : memref<1x8x128xf32, #tpu.memory_space<vmem>>, vector<1x8x128xf32>
    %12 = vector.shape_cast %11 : vector<1x8x128xf32> to vector<8x128xf32>
    %13 = arith.truncf %10 : vector<16x128xf32> to vector<16x128xbf16>
    %c0_13 = arith.constant 0 : index
    %c0_14 = arith.constant 0 : index
    %c0_15 = arith.constant 0 : index
    %14 = vector.load %arg4[%c0_13, %c0_14, %c0_15] : memref<1x128x256xbf16, #tpu.memory_space<vmem>>, vector<1x128x256xbf16>
    %15 = vector.shape_cast %14 : vector<1x128x256xbf16> to vector<128x256xbf16>
    %cst_16 = arith.constant dense<0.000000e+00> : vector<16x256xf32>
    %16 = tpu.matmul %13, %15, %cst_16 {dimension_numbers = #tpu.dot_dimension_numbers<[1], [0], [0], [1], [0, 0, 1, 1], [], []>} : vector<16x128xbf16>, vector<128x256xbf16>, vector<16x256xf32> -> vector<16x256xf32>
    %c0_17 = arith.constant 0 : index
    %c0_18 = arith.constant 0 : index
    %c0_19 = arith.constant 0 : index
    %17 = vector.load %arg5[%c0_17, %c0_18, %c0_19] : memref<1x1x256xf32, #tpu.memory_space<vmem>>, vector<1x1x256xf32>
    %18 = vector.shape_cast %17 : vector<1x1x256xf32> to vector<1x256xf32>
    %19 = vector.broadcast %18 : vector<1x256xf32> to vector<16x256xf32>
    %20 = arith.addf %16, %19 : vector<16x256xf32>
    %cst_20 = arith.constant 0.000000e+00 : f32
    %21 = vector.broadcast %cst_20 : f32 to vector<16x256xf32>
    %22 = arith.maximumf %20, %21 : vector<16x256xf32>
    %23 = arith.truncf %22 : vector<16x256xf32> to vector<16x256xbf16>
    %c0_21 = arith.constant 0 : index
    %c0_22 = arith.constant 0 : index
    %c0_23 = arith.constant 0 : index
    %24 = vector.load %arg6[%c0_21, %c0_22, %c0_23] : memref<1x256x128xbf16, #tpu.memory_space<vmem>>, vector<1x256x128xbf16>
    %25 = vector.shape_cast %24 : vector<1x256x128xbf16> to vector<256x128xbf16>
    %cst_24 = arith.constant dense<0.000000e+00> : vector<16x128xf32>
    %26 = tpu.matmul %23, %25, %cst_24 {dimension_numbers = #tpu.dot_dimension_numbers<[1], [0], [0], [1], [0, 0, 1, 1], [], []>} : vector<16x256xbf16>, vector<256x128xbf16>, vector<16x128xf32> -> vector<16x128xf32>
    %27 = vector.extract_strided_slice %12 {offsets = [0, 0], sizes = [1, 128], strides = [1, 1]} : vector<8x128xf32> to vector<1x128xf32>
    %28 = vector.broadcast %27 : vector<1x128xf32> to vector<16x128xf32>
    %29 = arith.addf %26, %28 : vector<16x128xf32>
    %c0_25 = arith.constant 0 : index
    %c0_26 = arith.constant 0 : index
    %30 = vector.load %arg12[%c0_25, %c0_26] : memref<8x16xf32, #tpu.memory_space<vmem>>, vector<8x16xf32>
    %cst_27 = arith.constant dense<0.000000e+00> : vector<8x128xf32>
    %31 = tpu.matmul %30, %29, %cst_27 {dimension_numbers = #tpu.dot_dimension_numbers<[1], [0], [0], [1], [0, 0, 1, 1], [], []>} : vector<8x16xf32>, vector<16x128xf32>, vector<8x128xf32> -> vector<8x128xf32>
    %32 = vector.extract_strided_slice %31 {offsets = [0, 0], sizes = [1, 128], strides = [1, 1]} : vector<8x128xf32> to vector<1x128xf32>
    %cst_28 = arith.constant 1.250000e-01 : f32
    %33 = vector.broadcast %cst_28 : f32 to vector<1x128xf32>
    %34 = arith.mulf %32, %33 : vector<1x128xf32>
    %35 = arith.mulf %29, %29 : vector<16x128xf32>
    %cst_29 = arith.constant dense<0.000000e+00> : vector<8x128xf32>
    %36 = tpu.matmul %30, %35, %cst_29 {dimension_numbers = #tpu.dot_dimension_numbers<[1], [0], [0], [1], [0, 0, 1, 1], [], []>} : vector<8x16xf32>, vector<16x128xf32>, vector<8x128xf32> -> vector<8x128xf32>
    %37 = vector.extract_strided_slice %36 {offsets = [0, 0], sizes = [1, 128], strides = [1, 1]} : vector<8x128xf32> to vector<1x128xf32>
    %cst_30 = arith.constant 1.250000e-01 : f32
    %38 = vector.broadcast %cst_30 : f32 to vector<1x128xf32>
    %39 = arith.mulf %37, %38 : vector<1x128xf32>
    %40 = arith.mulf %34, %34 : vector<1x128xf32>
    %41 = arith.subf %39, %40 : vector<1x128xf32>
    %cst_31 = arith.constant 0.000000e+00 : f32
    %42 = vector.broadcast %cst_31 : f32 to vector<1x128xf32>
    %43 = arith.maximumf %41, %42 : vector<1x128xf32>
    %44 = vector.broadcast %34 : vector<1x128xf32> to vector<16x128xf32>
    %45 = arith.subf %29, %44 : vector<16x128xf32>
    %cst_32 = arith.constant 9.99999974E-6 : f32
    %46 = vector.broadcast %cst_32 : f32 to vector<1x128xf32>
    %47 = arith.addf %43, %46 : vector<1x128xf32>
    %48 = math.rsqrt %47 : vector<1x128xf32>
    %49 = vector.broadcast %48 : vector<1x128xf32> to vector<16x128xf32>
    %50 = arith.mulf %45, %49 : vector<16x128xf32>
    %51 = vector.extract_strided_slice %12 {offsets = [1, 0], sizes = [1, 128], strides = [1, 1]} : vector<8x128xf32> to vector<1x128xf32>
    %52 = vector.broadcast %51 : vector<1x128xf32> to vector<16x128xf32>
    %53 = arith.mulf %50, %52 : vector<16x128xf32>
    %54 = vector.extract_strided_slice %12 {offsets = [2, 0], sizes = [1, 128], strides = [1, 1]} : vector<8x128xf32> to vector<1x128xf32>
    %55 = vector.broadcast %54 : vector<1x128xf32> to vector<16x128xf32>
    %56 = arith.addf %53, %55 : vector<16x128xf32>
    %c1_i32 = arith.constant 1 : i32
    %57 = arith.cmpi slt, %arg0, %c1_i32 : i32
    %58 = arith.extui %57 : i1 to i32
    %c0_i32_33 = arith.constant 0 : i32
    %59 = arith.cmpi ne, %58, %c0_i32_33 : i32
    scf.if %59 {
      %cst_36 = arith.constant 0.000000e+00 : f32
      %63 = vector.broadcast %cst_36 : f32 to vector<16x128xf32>
      %64 = arith.maximumf %56, %63 : vector<16x128xf32>
      %65 = arith.truncf %64 : vector<16x128xf32> to vector<16x128xbf16>
      %c0_37 = arith.constant 0 : index
      %c0_38 = arith.constant 0 : index
      %66 = vector.load %arg10[%c0_37, %c0_38] : memref<16x128xbf16, #tpu.memory_space<vmem>>, vector<16x128xbf16>
      tpu.vector_store %arg10[%c0_37, %c0_38], %65 {strides = array<i32>} : memref<16x128xbf16, #tpu.memory_space<vmem>>, vector<16x128xbf16>,
    } else {
    }
    %c1_i32_34 = arith.constant 1 : i32
    %60 = arith.cmpi eq, %arg0, %c1_i32_34 : i32
    %61 = arith.extui %60 : i1 to i32
    %c0_i32_35 = arith.constant 0 : i32
    %62 = arith.cmpi ne, %61, %c0_i32_35 : i32
    scf.if %62 {
      %63 = tpu.weird %56 : vector<16x128xf32> -> vector<16x128xi1>
      %cst_36 = arith.constant dense<true> : vector<16x128xi1>
      %64 = arith.xori %63, %cst_36 : vector<16x128xi1>
      %cst_37 = arith.constant 0.000000e+00 : f32
      %65 = vector.broadcast %cst_37 : f32 to vector<16x128xf32>
      %66 = arith.select %64, %56, %65 : vector<16x128xi1>, vector<16x128xf32>
      %c0_38 = arith.constant 0 : index
      %c0_39 = arith.constant 0 : index
      %67 = vector.load %arg9[%c0_38, %c0_39] : memref<16x128xf32, #tpu.memory_space<vmem>>, vector<16x128xf32>
      tpu.vector_store %arg9[%c0_38, %c0_39], %66 {strides = array<i32>} : memref<16x128xf32, #tpu.memory_space<vmem>>, vector<16x128xf32>,
    } else {
    }
    return
  }
  func.func @transform_1(%arg0: i32) -> (i32, i32) {
    %c0_i32 = arith.constant 0 : i32
    %c0_i32_0 = arith.constant 0 : i32
    %c0_i32_1 = arith.constant 0 : i32
    return %c0_i32, %c0_i32_0 : i32, i32
  }
  func.func @transform_2(%arg0: i32) -> (i32, i32) {
    %c0_i32 = arith.constant 0 : i32
    %c0_i32_0 = arith.constant 0 : i32
    %c0_i32_1 = arith.constant 0 : i32
    return %c0_i32, %c0_i32_0 : i32, i32
  }
  func.func @transform_3(%arg0: i32) -> (i32, i32, i32) {
    %c0_i32 = arith.constant 0 : i32
    %c0_i32_0 = arith.constant 0 : i32
    %c0_i32_1 = arith.constant 0 : i32
    return %arg0, %c0_i32, %c0_i32_0 : i32, i32, i32
  }
  func.func @transform_4(%arg0: i32) -> (i32, i32, i32) {
    %c0_i32 = arith.constant 0 : i32
    %c0_i32_0 = arith.constant 0 : i32
    %c0_i32_1 = arith.constant 0 : i32
    return %arg0, %c0_i32, %c0_i32_0 : i32, i32, i32
  }
  func.func @transform_5(%arg0: i32) -> (i32, i32, i32) {
    %c0_i32 = arith.constant 0 : i32
    %c0_i32_0 = arith.constant 0 : i32
    %c0_i32_1 = arith.constant 0 : i32
    return %arg0, %c0_i32, %c0_i32_0 : i32, i32, i32
  }
  func.func @transform_6(%arg0: i32) -> (i32, i32, i32) {
    %c0_i32 = arith.constant 0 : i32
    %c0_i32_0 = arith.constant 0 : i32
    %c0_i32_1 = arith.constant 0 : i32
    return %arg0, %c0_i32, %c0_i32_0 : i32, i32, i32
  }
  func.func @transform_7(%arg0: i32) -> (i32, i32, i32) {
    %c0_i32 = arith.constant 0 : i32
    %c0_i32_0 = arith.constant 0 : i32
    %c0_i32_1 = arith.constant 0 : i32
    return %arg0, %c0_i32, %c0_i32_0 : i32, i32, i32
  }
  func.func @transform_8(%arg0: i32) -> (i32, i32) {
    %c0_i32 = arith.constant 0 : i32
    %c0_i32_0 = arith.constant 0 : i32
    %c0_i32_1 = arith.constant 0 : i32
    return %c0_i32, %c0_i32_0 : i32, i32
  }
}

</mosaic_0001>

<bundles_post_ra>
// kernel: gnn_forward.1
= control target key start
LH: loop header
LB: loop body
LE: loop exit
PB: predicated region body
PF: predicated region fallthrough
CT: control target
= control target key end

     0   :  { %13 = vsyncpa [#allocation7], 0  ;;  %s1497_s27 = smov 0   ;;  %s1625_s0 = inlined_call_operand.vmem [shape: bf16[16,16], index: 0, kind: input, shape index: {}]   ;;  %s1626_s1 = inlined_call_operand.vmem [shape: bf16[16,128], index: 1, kind: input, shape index: {}]   ;;  %s1627_s2 = inlined_call_operand.hbm [shape: f32[16,16], index: 2, kind: input, shape index: {}]   ;;  %s1628_s3 = inlined_call_operand.vmem [shape: bf16[2,128,256], index: 3, kind: input, shape index: {}]   ;;  %s1629_s4 = inlined_call_operand.vmem [shape: f32[2,1,256], index: 4, kind: input, shape index: {}]   ;;  %s1630_s5 = inlined_call_operand.vmem [shape: bf16[2,256,128], index: 5, kind: input, shape index: {}]   ;;  %s1631_s6 = inlined_call_operand.vmem [shape: f32[2,8,128], index: 6, kind: input, shape index: {}]   ;;  %s1632_s7 = inlined_call_operand.vmem [shape: f32[2,16,128], index: 7, kind: input, shape index: {}]   ;;  %s1633_s8 = inlined_call_operand.vmem [shape: f32[16,128], index: 8, kind: output, shape index: {}]  }
   0x1 LB: > { %s1503_s28 = sadd.s32 4294967295, %s1442_s27   ;;  %p1202_p0 = scmp.ge.s32.totalorder %s1442_s27, 1  ;;  %s1442_s27 = sphi %s1497_s27, %s19_s27  }
   0x2   : > { %p217_p1 = scmp.lt.s32.totalorder %s1442_s27, 3  ;;  %s1444_s29 = smov [#allocation6]  }
   0x3   : > { %s232_s30 = sshll.u32 %s1444_s29, 4  ;;  %p1342_p4 = scmp.eq.s32.totalorder %s1503_s28, 0  ;;  %s233_s30 = int_to_ptr.vmem [resolvable:$true] %s232_s30 }
   0x4   : > { %p1508_p3 = pnand %p1202_p0, %p217_p1  ;;  %s1415_s10 = scalar_lea.vmem %s233_s30, 256 }
   0x5   : > { %p1416_p8 = scmp.ne.s32.totalorder %s233_s30, %s1415_s10  ;;  %p1423_p11 = scmp.lt.s32.totalorder %s233_s30, %s233_s30 }
   0x6   : > { %p1338_p5 = pneg %p1508_p3  ;;  %p1424_p12 = scmp.lt.s32.totalorder %s1415_s10, %s1415_s10 }
   0x8   : > { %p1339_p6 = pnand %p1342_p4, %p1338_p5  ;;  %p1425_p13 = por %p1424_p12, %p1423_p11 }
   0xa   : > { %p1406_p7 = pneg %p1339_p6 }
   0xc   : > { %p1418_p9 = pnand %p1416_p8, %p1406_p7 }
   0xe   : > { %p1419_p10 = pneg %p1418_p9 }
  0x10   : > { %p1426_p2 = pnand %p1425_p13, %p1419_p10 }
  0x12   : > { %1429 = shalt.err (!%p1426_p2)
}
  0x13   : > { %s1445_s11 = smov 128   ;;  %s1446_s12 = smov 8  }
  0x14   : > { %1341 = dma.hbm_to_vmem [thread:$0]  (!%p1339_p6), %s1627_s2, 256, %s233_s30, [#allocation7], %s1445_s11, %s1445_s11, %s1446_s12  }
  0x15   : > { %286 = sbr.rel (%p1508_p3) target bundleno = 912 (0x390), region = 48 }
  0x1a   : > { %1435 = dma.done.wait (%p1342_p4), [#allocation7], 256  }
  0x1b   : > { %1437 = vsyncadd (%p1342_p4), [#allocation7], 4294967040  ;;  %p331_p0 = scmp.lt.s32.totalorder %s1503_s28, 1  ;;  %p1635_p1 = scmp.ne.s32.totalorder %s1503_s28, 0 }
  0x1d   : > { %s332_s15 = scalar_select %p331_p0, %s1503_s28, 1 }
  0x1f   : > { %s1263_s16 = sshll.u32 %s332_s15, 7  ;;  %s1209_s17 = sshll.u32 %s332_s15, 1 }
  0x20   : > { %s1531_s20 = scalar_lea.vmem %s1628_s3, %s1263_s16  ;;  %s1536_s23 = scalar_lea.vmem %s1629_s4, %s1209_s17 }
  0x21   : > { %s1541_s26 = scalar_lea.vmem %s1630_s5, %s1263_s16  ;;  %s1212_s29 = sshll.u32 %s332_s15, 3 }
  0x22   : > { %s1546_s10 = scalar_lea.vmem %s1631_s6, %s1212_s29  ;;  %s1265_s11 = sshll.u32 %s332_s15, 4 }
  0x23   : > { %s353_s14 = scalar_lea.vmem %s1632_s7, %s1265_s11  ;;  %358 = sbr.rel (%p1635_p1) target bundleno = 51 (0x33), region = 56 }
  0x28   : > { %v392_v0 = vld [vmem:[%s1625_s0] sm:$0xff] }
  0x29   : > { %393 = vst [vmem:[#allocation3] sm:$0xff] %v392_v0 }
  0x2a   : > { %401 = vsyncadd [#allocation5], 128  ;;  %v402_v1 = vld [vmem:[%s1626_s1] sm:$0xff]   ;;  %v406_v2 = vlaneseq  ;;  %vm411_vm0 = vcmask 130048   ;;  %v1447_v4 = vmov 0.0  }
  0x2b   : > { %404 = vst [vmem:[#allocation2] sm:$0xff] %v402_v1  }
  0x2c   : > { %v407_v3 = vand.u32 127, %v406_v2 }
  0x2e   : > { %vm408_vm1 = vcmp.lt.s32.totalorder %v407_v3, 8 }
  0x2f   : > { %v1216_v5 = vsel %vm408_vm1, 1.0, %v1447_v4 }
  0x30   : > { %412 = vst.msk [vmem:[#allocation4] sm:$0xff] %vm411_vm0, %v1216_v5 }
  0x31   : > { %1438 = dma.done.wait [#allocation5], 128 }
  0x32   : > { %1439 = vsyncadd [#allocation5], 4294967168 }
  0x33 PF: > { %v420_v6 = vld [vmem:[%s353_s14 + $0x8] sm:$0xff]  ;;  %v419_v7 = vld [vmem:[%s353_s14] sm:$0xff]  ;;  %vm421_vm2 = vcmask 130048   ;;  %v1448_v8 = vmov 0.0   ;;  %v1361_v12 = vld [vmem:[#allocation3] sm:$0xff]   ;;  %vm1449_vm3 = vmmov 0   ;;  %v582_v55 = vlaneseq }
  0x34   : > { %1307 = vmatprep.subr.mxu0 %v420_v6  ;;  %1314 = vmatprep.subr.bf16.mxu1 %v1448_v8  ;;  %v1360_v9 = vld [vmem:[#allocation2] sm:$0xff]   ;;  %v417_v10 = vld [vmem:[#allocation6] sm:$0xff]  ;;  %v1362_v13 = vld [vmem:[%s1531_s20 + $0x70] ss:$8 sps:$4 sm:$0xff]   ;;  %v1450_v29 = vmov 0   ;;  %p1256_p2 = scmp.ge.s32.totalorder %s1503_s28, 1 }
  0x35   : > { %1308 = vmatpush3.msra.mxu0 %v420_v6  ;;  %1311 = vmatprep.mubr.msk.f32.mxu0 %vm421_vm2, %v417_v10  ;;  %v418_v11 = vld [vmem:[#allocation6 + $0x8] sm:$0xff]  ;;  %v1364_v14 = vld [vmem:[%s1531_s20 + $0x74] ss:$8 sps:$4 sm:$0xff]   ;;  %v1368_v18 = vld [vmem:[%s1531_s20 + $0x50] ss:$8 sps:$4 sm:$0xff]   ;;  %v1601_v56 = vshrl.u32 %v582_v55, 7 }
  0x36   : > { %1309 = vmatprep.subr.mxu0 %v419_v7  ;;  %1315 = vmatpush3.bf16.msra.mxu1 %v1360_v9  ;;  %v1367_v15 = vld [vmem:[%s1531_s20 + $0x64] ss:$8 sps:$4 sm:$0xff]   ;;  %v1365_v16 = vld [vmem:[%s1531_s20 + $0x60] ss:$8 sps:$4 sm:$0xff]   ;;  %v1370_v17 = vld [vmem:[%s1531_s20 + $0x54] ss:$8 sps:$4 sm:$0xff]  }
  0x37   : > { %1310 = vmatpush3.msra.mxu0 %v419_v7  ;;  %1316 = vmatprep.mubr.msk.bf16.mxu1 %vm1449_vm3, %v1448_v8  ;;  %v1373_v19 = vld [vmem:[%s1531_s20 + $0x44] ss:$8 sps:$4 sm:$0xff]   ;;  %v1371_v20 = vld [vmem:[%s1531_s20 + $0x40] ss:$8 sps:$4 sm:$0xff]   ;;  %v1376_v21 = vld [vmem:[%s1531_s20 + $0x34] ss:$8 sps:$4 sm:$0xff]  }
  0x38   : > { %1312 = vmatmul.mubr.msk.f32.vlgmr.msra.gmra.mxu0 %vm421_vm2, %v418_v11  ;;  %672 = vmatprep.subr.bf16.mxu0 %v1364_v14  ;;  %v1374_v22 = vld [vmem:[%s1531_s20 + $0x30] ss:$8 sps:$4 sm:$0xff]   ;;  %v1379_v23 = vld [vmem:[%s1531_s20 + $0x24] ss:$8 sps:$4 sm:$0xff]   ;;  %v1377_v24 = vld [vmem:[%s1531_s20 + $0x20] ss:$8 sps:$4 sm:$0xff]  }
  0x39   : > { %1317 = vmatmul.mubr.msk.bf16.vlgmr.msra.gmra.mxu1 %vm421_vm2, %v1361_v12  ;;  %673 = vmatpush1.bf16.msra.mxu0 %v1362_v13  ;;  %v1382_v25 = vld [vmem:[%s1531_s20 + $0x14] ss:$8 sps:$4 sm:$0xff]   ;;  %v1380_v26 = vld [vmem:[%s1531_s20 + $0x10] ss:$8 sps:$4 sm:$0xff]   ;;  %v1385_v27 = vld [vmem:[%s1531_s20 + $0x4] ss:$8 sps:$4 sm:$0xff]  }
  0x3a   : > { %674 = vmatprep.subr.bf16.mxu0 %v1367_v15  ;;  %v1383_v28 = vld [vmem:[%s1531_s20] ss:$8 sps:$4 sm:$0xff]   ;;  %704 = vmatprep.mubr.bf16.mxu0 %v1450_v29  ;;  %v1386_v30 = vld [vmem:[%s1541_s26 + $0x78] sm:$0xff]   ;;  %v1388_v32 = vld [vmem:[%s1541_s26 + $0x70] sm:$0xff]   ;;  %v588_v57 = vsub.s32 1, %v1601_v56  ;;  %v584_v58 = vsub.s32 0, %v1601_v56 }
  0x3b   : > { %v1387_v31 = vld [vmem:[%s1541_s26 + $0x38] sm:$0xff]   ;;  %1279 = vmatprep.subr.bf16.mxu1 %v1386_v30  ;;  %v1389_v33 = vld [vmem:[%s1541_s26 + $0x30] sm:$0xff]   ;;  %v1390_v34 = vld [vmem:[%s1541_s26 + $0x68] sm:$0xff]  }
  0x3c   : > { %1280 = vmatpush3.bf16.msra.mxu1 %v1387_v31  ;;  %v1391_v35 = vld [vmem:[%s1541_s26 + $0x28] sm:$0xff]   ;;  %v1392_v36 = vld [vmem:[%s1541_s26 + $0x60] sm:$0xff]   ;;  %v1394_v38 = vld [vmem:[%s1541_s26 + $0x58] sm:$0xff]  }
  0x3d   : > { %675 = vmatpush1.bf16.msra.mxu0 %v1365_v16  ;;  %1281 = vmatprep.subr.bf16.mxu1 %v1388_v32  ;;  %v1393_v37 = vld [vmem:[%s1541_s26 + $0x20] sm:$0xff]   ;;  %v1395_v39 = vld [vmem:[%s1541_s26 + $0x18] sm:$0xff]   ;;  %v1396_v49 = vld [vmem:[%s1541_s26 + $0x50] sm:$0xff]  }
  0x3e   : > { %676 = vmatprep.subr.bf16.mxu0 %v1370_v17  ;;  %v1397_v50 = vld [vmem:[%s1541_s26 + $0x10] sm:$0xff]   ;;  %v1398_v51 = vld [vmem:[%s1541_s26 + $0x48] sm:$0xff]   ;;  %v1400_v53 = vld [vmem:[%s1541_s26 + $0x40] sm:$0xff]  }
  0x3f   : > { %v1399_v52 = vld [vmem:[%s1541_s26 + $0x8] sm:$0xff]   ;;  %v1401_v54 = vld [vmem:[%s1541_s26] sm:$0xff]  }
  0x40   : > { %1282 = vmatpush3.bf16.msra.mxu1 %v1389_v33  ;;  %v580_v59 = vld [vmem:[%s1536_s23] sm:$0x3] }
  0x41   : > { %677 = vmatpush1.bf16.msra.mxu0 %v1368_v18  ;;  %1283 = vmatprep.subr.bf16.mxu1 %v1390_v34  ;;  %v589_v61 = vrot.slane %v580_v59, %v588_v57  ;;  %v585_v62 = vrot.slane %v580_v59, %v584_v58  ;;  %v562_v14 = vld [vmem:[%s1546_s10] sm:$0xff] }
  0x42   : > { %678 = vmatprep.subr.bf16.mxu0 %v1373_v19  ;;  %v756_v17 = vrot.slane %v562_v14, %v584_v58 }
  0x44   : > { %1284 = vmatpush3.bf16.msra.mxu1 %v1391_v35 }
  0x45   : > { %679 = vmatpush1.bf16.msra.mxu0 %v1371_v20  ;;  %1285 = vmatprep.subr.bf16.mxu1 %v1392_v36 }
  0x46   : > { %680 = vmatprep.subr.bf16.mxu0 %v1376_v21 }
  0x48   : > { %1286 = vmatpush3.bf16.msra.mxu1 %v1393_v37  ;;  %v1067_v37 = vsub.s32 2, %v1601_v56 }
  0x49   : > { %681 = vmatpush1.bf16.msra.mxu0 %v1374_v22  ;;  %1287 = vmatprep.subr.bf16.mxu1 %v1394_v38 }
  0x4a   : > { %682 = vmatprep.subr.bf16.mxu0 %v1379_v23 }
  0x4c   : > { %1288 = vmatpush3.bf16.msra.mxu1 %v1395_v39  ;;  %v1062_v39 = vrot.slane %v562_v14, %v588_v57 }
  0x4d   : > { %683 = vmatpush1.bf16.msra.mxu0 %v1377_v24  ;;  %1289 = vmatprep.subr.bf16.mxu1 %v1396_v49  ;;  %v894_v24 = vld [vmem:[#allocation4] sm:$0xff] }
  0x4e   : > { %684 = vmatprep.subr.bf16.mxu0 %v1382_v25 }
  0x50   : > { %1290 = vmatpush3.bf16.msra.mxu1 %v1397_v50 }
  0x51   : > { %685 = vmatpush1.bf16.msra.mxu0 %v1380_v26  ;;  %1291 = vmatprep.subr.bf16.mxu1 %v1398_v51 }
  0x52   : > { %686 = vmatprep.subr.bf16.mxu0 %v1385_v27 }
  0x54   : > { %1292 = vmatpush3.bf16.msra.mxu1 %v1399_v52 }
  0x55   : > { %687 = vmatpush1.bf16.msra.mxu0 %v1383_v28  ;;  %1293 = vmatprep.subr.bf16.mxu1 %v1400_v53 }
  0x56   : > { %1320 = vmatprep.subr.mxu0 %v1448_v8 }
  0x58   : > { %1294 = vmatpush3.bf16.msra.mxu1 %v1401_v54 }
  0x59   : > { %1327 = vmatprep.subr.mxu1 %v1448_v8 }
  0xf8   : > { %v1313_v40 = vpop.f32.mrf.mxu0 }
  0xf9   : > { %v555_v41 = vpop.f32.mrf.mxu1 }
  0xfa   : > { %v494_v42 = vpop.f32.mrf.mxu0 }
  0xfb   : > { %v1318_v43 = vpop.f32.mrf.mxu1  ;;  %v556_v45 = vadd.f32 %v555_v41, %v494_v42  ;;  %v1068_v42 = vrot.slane %v562_v14, %v1067_v37 }
  0xfd   : > { %v558_v44 = vpop.f32.mrf.mxu1 }
  0xfe   : > { %v559_v46 = vadd.f32 %v1313_v40, %v558_v44 }
  0xff   : > { %v1319_v47 = vpop.f32.mrf.mxu1 }
 0x100   : > { %v563_v48 = vpack.c.bf16 %v559_v46, %v556_v45 }
 0x102   : > { %705 = vmatmul.mubr.bf16.vlgmr.msra.gmra.mxu0 %v563_v48 }
 0x103   : > { %1324 = vmatprep.mubr.msk.f32.mxu0 %vm1449_vm3, %v1448_v8 }
 0x1c2   : > { %v706_v60 = vpop.f32.mrf.mxu0 }
 0x1c3   : > { %v707_v3 = vadd.f32 %v706_v60, %v585_v62 }
 0x1c4   : > { %v708_v63 = vpop.f32.mrf.mxu0 }
 0x1c5   : > { %v709_v1 = vadd.f32 %v708_v63, %v589_v61  ;;  %v715_v10 = vmax.f32 %v707_v3, 0.0 }
 0x1c6   : > { %v710_v0 = vpop.f32.mrf.mxu0 }
 0x1c7   : > { %v711_v2 = vadd.f32 %v710_v0, %v585_v62  ;;  %v716_v7 = vmax.f32 %v709_v1, 0.0 }
 0x1c8   : > { %v712_v4 = vpop.f32.mrf.mxu0 }
 0x1c9   : > { %v713_v5 = vadd.f32 %v712_v4, %v589_v61  ;;  %v717_v6 = vmax.f32 %v711_v2, 0.0 }
 0x1cb   : > { %v718_v9 = vmax.f32 %v713_v5, 0.0  ;;  %v719_v12 = vpack.c.bf16 %v717_v6, %v715_v10 }
 0x1cd   : > { %v720_v11 = vpack.c.bf16 %v718_v9, %v716_v7 }
 0x1cf   : > { %885 = vmatprep.mubr.bf16.mxu1 %v720_v11 }
 0x1d0   : > { %886 = vmatmul.mubr.bf16.vlgmr.msra.gmra.mxu1 %v719_v12 }
 0x1d1   : > { %1331 = vmatprep.mubr.msk.f32.mxu1 %vm1449_vm3, %v1448_v8 }
 0x290   : > { %v1295_v13 = vpop.f32.mrf.mxu1 }
 0x292   : > { %v1296_v15 = vpop.f32.mrf.mxu1 }
 0x293   : > { %v1297_v18 = vadd.f32 %v1296_v15, %v1295_v13 }
 0x294   : > { %v1298_v16 = vpop.f32.mrf.mxu1 }
 0x295   : > { %v888_v21 = vadd.f32 %v1297_v18, %v756_v17 }
 0x296   : > { %v1299_v19 = vpop.f32.mrf.mxu1 }
 0x297   : > { %v1300_v20 = vadd.f32 %v1299_v19, %v1298_v16  ;;  %v969_v25 = vmul.f32 %v888_v21, %v888_v21 }
 0x299   : > { %v891_v22 = vadd.f32 %v1300_v20, %v756_v17 }
 0x29b   : > { %v970_v23 = vmul.f32 %v891_v22, %v891_v22  ;;  %1321 = vmatpush3.msra.mxu0 %v891_v22 }
 0x29c   : > { %1322 = vmatprep.subr.mxu0 %v1448_v8 }
 0x29d   : > { %1323 = vmatpush3.msra.mxu0 %v888_v21  ;;  %1328 = vmatpush3.msra.mxu1 %v970_v23 }
 0x29e   : > { %1325 = vmatmul.mubr.msk.f32.vlgmr.msra.gmra.mxu0 %vm421_vm2, %v894_v24  ;;  %1329 = vmatprep.subr.mxu1 %v1448_v8 }
 0x29f   : > { %1330 = vmatpush3.msra.mxu1 %v969_v25 }
 0x2a0   : > { %1332 = vmatmul.mubr.msk.f32.vlgmr.msra.gmra.mxu1 %vm421_vm2, %v894_v24 }
 0x35e   : > { %v964_v26 = vpop.f32.mrf.mxu0 }
 0x35f   : > { %v968_v27 = vmul.f32 0.125, %v964_v26 }
 0x360   : > { %v1037_v28 = vpop.f32.mrf.mxu1  ;;  %v1326_v29 = vpop.f32.mrf.mxu0 }
 0x361   : > { %v1042_v30 = vmul.f32 %v968_v27, %v968_v27  ;;  %v1041_v31 = vmul.f32 0.125, %v1037_v28  ;;  %v1048_v36 = vrot.slane %v968_v27, %v584_v58 }
 0x362   : > { %v1333_v32 = vpop.f32.mrf.mxu1 }
 0x363   : > { %v1043_v33 = vsub.f32 %v1041_v31, %v1042_v30  ;;  %v1049_v8 = vsub.f32 %v888_v21, %v1048_v36  ;;  %v1050_v40 = vsub.f32 %v891_v22, %v1048_v36 }
 0x365   : > { %v1044_v34 = vmax.f32 %v1043_v33, 0.0 }
 0x367   : > { %v1051_v35 = vadd.f32 1e-05, %v1044_v34 }
 0x369   : > { %1402 = vrsqrt.f32 %v1051_v35 }
 0x376   : > { %v1403_v38 = vpop.eup %1402 }
 0x377   : > { %v1056_v41 = vrot.slane %v1403_v38, %v584_v58 }
 0x379   : > { %v1057_v43 = vmul.f32 %v1056_v41, %v1049_v8  ;;  %v1058_v44 = vmul.f32 %v1056_v41, %v1050_v40  ;;  %1074 = sbr.rel (%p1256_p2) target bundleno = 900 (0x384), region = 94 }
 0x37b   : > { %v1063_v45 = vmul.f32 %v1062_v39, %v1057_v43  ;;  %v1064_v46 = vmul.f32 %v1062_v39, %v1058_v44 }
 0x37d   : > { %v1069_v47 = vadd.f32 %v1068_v42, %v1063_v45  ;;  %v1070_v48 = vadd.f32 %v1068_v42, %v1064_v46 }
 0x37f   : > { %v1075_v49 = vmax.f32 %v1069_v47, 0.0  ;;  %v1076_v50 = vmax.f32 %v1070_v48, 0.0 }
 0x381   : > { %v1271_v51 = vpack.c.bf16 %v1076_v50, %v1075_v49 }
 0x383   : > { %1272 = vst [vmem:[#allocation2] sm:$0xff] %v1271_v51  }
 0x384 PF: > { %p1259_p3 = scmp.ne.s32.totalorder %s1503_s28, 1 }
 0x386   : > { %1090 = sbr.rel (%p1259_p3) target bundleno = 912 (0x390), region = 98 }
 0x38b   : > { %vm1091_vm4 = vweird.f32 %v1069_v47  ;;  %vm1092_vm5 = vweird.f32 %v1070_v48  ;;  %vm1451_vm6 = vmmov 1  }
 0x38c   : > { %vm1093_vm7 = vmxor %vm1091_vm4, %vm1451_vm6 }
 0x38d   : > { %v1095_v52 = vsel %vm1093_vm7, %v1069_v47, 0.0  ;;  %vm1094_vm8 = vmxor %vm1092_vm5, %vm1451_vm6 }
 0x38e   : > { %1097 = vst [vmem:[%s1633_s8] sm:$0xff] %v1095_v52  ;;  %v1096_v53 = vsel %vm1094_vm8, %v1070_v48, 0.0 }
 0x38f   : > { %1098 = vst [vmem:[%s1633_s8 + $0x8] sm:$0xff] %v1096_v53 }
 0x390 PF: > { %s19_s27 = sadd.s32 1, %s1442_s27  }
 0x391   : > { %p16_p4 = scmp.ge.s32.totalorder %s19_s27, 4  }
 0x393   :  { %18 = sbr.rel (!%p16_p4) target bundleno = 1 (0x1), region = 145 }
 0x398   :  { %1110 = vsyncpa [#allocation7], 1 }
 0x399   :  { %1112 = vsyncpa [#allocation7 + $0x1], 1 }
 0x39a   :  { %1113 = vsyncmov [#allocation5] }
 0x39d   :  { %s1114_s28 = vpop.sfrf %1113 }
 0x39e   :  { %p1262_p5 = scmp.ne.s32.totalorder %s1114_s28, 0 }
 0x3a0   :  { %1118 = shalt.err (%p1262_p5)  }

</bundles_post_ra>
